<compile_context>
chip_gen: v7x
topology: tpu7x:2x2x1
jax: 0.10.0
libtpu: 0.0.40
codegen_flags: <defaults>
</compile_context>

<pallas_src>
import functools

import jax
import jax.numpy as jnp
from jax.experimental import pallas as pl
from jax.experimental.pallas import tpu as pltpu

BN_EPS = 1e-5
HIDDEN = 64


# --------------------------------------------------------------------------- #
# Kernels
# --------------------------------------------------------------------------- #
def _sage1_kernel(a_ref, xs_ref, xd_ref, wl_ref, wr_ref, b_ref, h_ref):
    """SAGEConv(4,64) + folded BN1 + ReLU for one destination-row tile.

    a_ref : [tm, Np]  bf16  row-normalized adjacency tile (rows = dst)
    xs_ref: [Np, 4]   f32   full source features (block index fixed -> resident)
    xd_ref: [tm, 4]   f32   destination-row tile of the features
    wl/wr : [4, 64]   f32   BN-folded lin_l / lin_r weights
    b_ref : [1, 64]   f32   BN-folded bias
    h_ref : [tm, 64]  f32   output tile
    """
    # Reassociated: A @ (X @ Wl).  X is only 4 features wide, so this per-tile
    # projection is negligible (K=4) and it removes the lane-sparse [tm, 4]
    # aggregation intermediate.
    xl = jnp.dot(xs_ref[...], wl_ref[...], preferred_element_type=jnp.float32)
    agg = jnp.dot(a_ref[...], xl.astype(jnp.bfloat16),
                  preferred_element_type=jnp.float32)
    h = (agg
         + jnp.dot(xd_ref[...], wr_ref[...], preferred_element_type=jnp.float32)
         + b_ref[...])
    h_ref[...] = jnp.maximum(h, 0.0)


def _sage2_head_kernel(a_ref, hs_ref, hd_ref, wl_ref, wr_ref, b_ref,
                       wp_ref, bp_ref, o_ref):
    """SAGEConv(64,64) + folded BN2 + ReLU + Linear(64,1) + sigmoid, one tile.

    a_ref : [tm, Np]  bf16
    hs_ref: [Np, 64]  f32   full layer-1 activations (resident across tiles)
    hd_ref: [tm, 64]  f32   destination-row tile of layer-1 activations
    wl/wr : [64, 64]  f32   BN-folded weights
    b_ref : [1, 64]   f32   BN-folded bias
    wp_ref: [1, 64]   f32   predictor weight stored as a row (lane-dense)
    bp_ref: [1, 1]    f32
    o_ref : [tm, 1]   f32
    """
    # (A @ H) @ Wl: H is already 64 wide, so aggregating first keeps the
    # per-tile work non-redundant (no full-H projection repeated per tile).
    agg = jnp.dot(a_ref[...], hs_ref[...].astype(jnp.bfloat16),
                  preferred_element_type=jnp.float32)
    h2 = (jnp.dot(agg, wl_ref[...], preferred_element_type=jnp.float32)
          + jnp.dot(hd_ref[...], wr_ref[...], preferred_element_type=jnp.float32)
          + b_ref[...])
    h2 = jnp.maximum(h2, 0.0)
    # dropout(p=0.2) is identity in eval mode.
    # Lane-dense predictor head: VPU multiply + feature-axis reduction instead
    # of a [64,1] MXU matmul with a single live output lane.
    logits = jnp.sum(h2 * wp_ref[...], axis=-1, keepdims=True) + bp_ref[...]
    o_ref[...] = jax.nn.sigmoid(logits)


# --------------------------------------------------------------------------- #
# Glue
# --------------------------------------------------------------------------- #
def _round_up(x, m):
    return (x + m - 1) // m * m


def _fold_bn(w_l, b_l, w_r, gamma, beta, mean, var):
    """Fold eval-mode BatchNorm into the SAGE linear weights and bias."""
    scale = gamma / jnp.sqrt(var + BN_EPS)              # [1, HIDDEN]
    return w_l * scale, w_r * scale, (b_l - mean) * scale + beta


def build_norm_adjacency(edge_index, num_nodes_padded):
    """Dense row-normalized adjacency in bf16: A[dst, src] = 1/deg(dst).

    Isolated nodes (and padded rows) aggregate to zero, matching scatter-mean.
    """
    # TODO(synk): for large graphs replace this O(N^2) dense build with a
    # CSR gather driven by PrefetchScalarGridSpec so A is never materialized.
    src = edge_index[0]
    dst = edge_index[1]
    a = jnp.zeros((num_nodes_padded, num_nodes_padded), jnp.float32)
    a = a.at[dst, src].add(1.0)
    deg = jnp.sum(a, axis=1, keepdims=True)
    return (a / jnp.maximum(deg, 1.0)).astype(jnp.bfloat16)


def _full_spec(arr):
    """Whole-array (resident) BlockSpec for a 2-D operand under a 1-D grid."""
    return pl.BlockSpec(arr.shape, lambda i: (0, 0))


@functools.partial(jax.jit, static_argnames=("row_tile",))
def bus_stop_predictor(x, edge_index, params, *, row_tile=256):
    n, f_in = x.shape
    tm = min(row_tile, _round_up(n, 8))
    n_pad = _round_up(n, tm)
    n_tiles = n_pad // tm

    a = build_norm_adjacency(edge_index, n_pad)                     # [Np, Np] bf16
    x_p = jnp.zeros((n_pad, f_in), jnp.float32).at[:n].set(x)       # zero-padded rows

    # Fold BatchNorm (eval mode, running stats) into the SAGE linears.
    w1l, w1r, b1 = _fold_bn(params["w1l"], params["b1l"], params["w1r"],
                            params["g1"], params["be1"], params["m1"], params["v1"])
    w2l, w2r, b2 = _fold_bn(params["w2l"], params["b2l"], params["w2r"],
                            params["g2"], params["be2"], params["m2"], params["v2"])
    wp_row = params["wp"].T                                         # [1, 64]
    bp = params["bp"]                                               # [1, 1]

    parallel = pltpu.CompilerParams(dimension_semantics=("parallel",))

    # ---- Layer 1: SAGEConv(4,64) + BN1(folded) + ReLU ----------------------
    h = pl.pallas_call(
        _sage1_kernel,
        out_shape=jax.ShapeDtypeStruct((n_pad, HIDDEN), jnp.float32),
        grid=(n_tiles,),
        in_specs=[
            pl.BlockSpec((tm, n_pad), lambda i: (i, 0)),    # A row tile (streamed)
            _full_spec(x_p),                                # full X (resident)
            pl.BlockSpec((tm, f_in), lambda i: (i, 0)),     # X dst tile
            _full_spec(w1l), _full_spec(w1r), _full_spec(b1),
        ],
        out_specs=pl.BlockSpec((tm, HIDDEN), lambda i: (i, 0)),
        compiler_params=parallel,
    )(a, x_p, x_p, w1l, w1r, b1)

    # ---- Layer 2: SAGEConv(64,64) + BN2(folded) + ReLU + Linear + sigmoid ---
    out = pl.pallas_call(
        _sage2_head_kernel,
        out_shape=jax.ShapeDtypeStruct((n_pad, 1), jnp.float32),
        grid=(n_tiles,),
        in_specs=[
            pl.BlockSpec((tm, n_pad), lambda i: (i, 0)),    # A row tile (streamed)
            _full_spec(h),                                  # full H (resident)
            pl.BlockSpec((tm, HIDDEN), lambda i: (i, 0)),   # H dst tile
            _full_spec(w2l), _full_spec(w2r), _full_spec(b2),
            _full_spec(wp_row), _full_spec(bp),
        ],
        out_specs=pl.BlockSpec((tm, 1), lambda i: (i, 0)),
        compiler_params=parallel,
    )(a, h, h, w2l, w2r, b2, wp_row, bp)

    return out[:n]


# --------------------------------------------------------------------------- #
# Parameters & pure-JAX reference (un-folded, f32) of the eval forward pass
# --------------------------------------------------------------------------- #
def init_params(key):
    ks = jax.random.split(key, 6)

    def lin_w(k, fan_in, fan_out):
        # stored as [in, out] so the kernel can do x @ W directly
        return (jax.random.normal(k, (fan_in, fan_out), jnp.float32)
                * (1.0 / jnp.sqrt(fan_in)))

    return {
        # SAGEConv(4, 64): lin_l (with bias), lin_r (no bias)
        "w1l": lin_w(ks[0], 4, HIDDEN),
        "b1l": jnp.zeros((1, HIDDEN), jnp.float32),
        "w1r": lin_w(ks[1], 4, HIDDEN),
        # BatchNorm(64): PyTorch defaults (running_mean=0, running_var=1)
        "g1": jnp.ones((1, HIDDEN), jnp.float32),
        "be1": jnp.zeros((1, HIDDEN), jnp.float32),
        "m1": jnp.zeros((1, HIDDEN), jnp.float32),
        "v1": jnp.ones((1, HIDDEN), jnp.float32),
        # SAGEConv(64, 64)
        "w2l": lin_w(ks[2], HIDDEN, HIDDEN),
        "b2l": jnp.zeros((1, HIDDEN), jnp.float32),
        "w2r": lin_w(ks[3], HIDDEN, HIDDEN),
        # BatchNorm(64)
        "g2": jnp.ones((1, HIDDEN), jnp.float32),
        "be2": jnp.zeros((1, HIDDEN), jnp.float32),
        "m2": jnp.zeros((1, HIDDEN), jnp.float32),
        "v2": jnp.ones((1, HIDDEN), jnp.float32),
        # predictor Linear(64, 1)
        "wp": lin_w(ks[4], HIDDEN, 1),
        "bp": jnp.zeros((1, 1), jnp.float32),
    }


def reference_forward(x, edge_index, params):
    n = x.shape[0]
    src, dst = edge_index[0], edge_index[1]
    a = jnp.zeros((n, n), jnp.float32).at[dst, src].add(1.0)
    a = a / jnp.maximum(jnp.sum(a, axis=1, keepdims=True), 1.0)
    h = a @ x @ params["w1l"] + params["b1l"] + x @ params["w1r"]
    h = (h - params["m1"]) / jnp.sqrt(params["v1"] + BN_EPS) * params["g1"] + params["be1"]
    h = jnp.maximum(h, 0.0)
    h2 = a @ h @ params["w2l"] + params["b2l"] + h @ params["w2r"]
    h2 = (h2 - params["m2"]) / jnp.sqrt(params["v2"] + BN_EPS) * params["g2"] + params["be2"]
    h2 = jnp.maximum(h2, 0.0)
    return jax.nn.sigmoid(h2 @ params["wp"] + params["bp"])


if __name__ == "__main__":
    key = jax.random.PRNGKey(0)
    k_feat, k_edge, k_param = jax.random.split(key, 3)

    num_nodes = 16
    num_edges = 40
    in_feats = 4

    x = jax.random.normal(k_feat, (num_nodes, in_feats), jnp.float32)
    edge_index = jax.random.randint(k_edge, (2, num_edges), 0, num_nodes, jnp.int32)
    params = init_params(k_param)

    # row_tile=8 -> 2 destination-row tiles per layer, exercising the grid.
    out = bus_stop_predictor(x, edge_index, params, row_tile=8)
    out = jax.block_until_ready(out)

    ref = reference_forward(x, edge_index, params)
    assert out.shape == (num_nodes, 1)
    assert bool(jnp.all(jnp.isfinite(out)))
    # bf16 adjacency / aggregation operands -> looser tolerance than pure f32.
    err = float(jnp.max(jnp.abs(out - ref)))
    assert err < 3e-2, f"max abs error {err}"

    print("KERNEL_OK")
</pallas_src>

<mosaic_0001>
module attributes {stable_mosaic.version = 11 : i64} {
  func.func @_sage1_kernel(%arg0: i32, %arg1: memref<8x16xbf16, #tpu.memory_space<vmem>>, %arg2: memref<16x4xf32, #tpu.memory_space<vmem>>, %arg3: memref<8x4xf32, #tpu.memory_space<vmem>>, %arg4: memref<4x64xf32, #tpu.memory_space<vmem>>, %arg5: memref<4x64xf32, #tpu.memory_space<vmem>>, %arg6: memref<1x64xf32, #tpu.memory_space<vmem>>, %arg7: memref<8x64xf32, #tpu.memory_space<vmem>>) attributes {dimension_semantics = [#tpu.dimension_semantics<parallel>], iteration_bounds = array<i64: 2>, scalar_prefetch = 0 : i64, scratch_operands = 0 : i64, tpu.core_type = #tpu.core_type<tc>, window_params = [{transform_indices = @transform_0, window_bounds = array<i64: 8, 16>}, {pipeline_mode = #tpu.pipeline_mode<synchronous>, transform_indices = @transform_1, window_bounds = array<i64: 16, 4>}, {transform_indices = @transform_2, window_bounds = array<i64: 8, 4>}, {pipeline_mode = #tpu.pipeline_mode<synchronous>, transform_indices = @transform_3, window_bounds = array<i64: 4, 64>}, {pipeline_mode = #tpu.pipeline_mode<synchronous>, transform_indices = @transform_4, window_bounds = array<i64: 4, 64>}, {pipeline_mode = #tpu.pipeline_mode<synchronous>, transform_indices = @transform_5, window_bounds = array<i64: 1, 64>}, {transform_indices = @transform_6, window_bounds = array<i64: 8, 64>}]} {
    %c0 = arith.constant 0 : index
    %c0_0 = arith.constant 0 : index
    %0 = vector.load %arg2[%c0, %c0_0] : memref<16x4xf32, #tpu.memory_space<vmem>>, vector<16x4xf32>
    %c0_1 = arith.constant 0 : index
    %c0_2 = arith.constant 0 : index
    %1 = vector.load %arg4[%c0_1, %c0_2] : memref<4x64xf32, #tpu.memory_space<vmem>>, vector<4x64xf32>
    %cst = arith.constant dense<0.000000e+00> : vector<16x64xf32>
    %2 = tpu.matmul %0, %1, %cst {dimension_numbers = #tpu.dot_dimension_numbers<[1], [0], [0], [1], [0, 0, 1, 1], [], []>} : vector<16x4xf32>, vector<4x64xf32>, vector<16x64xf32> -> vector<16x64xf32>
    %c0_3 = arith.constant 0 : index
    %c0_4 = arith.constant 0 : index
    %3 = vector.load %arg1[%c0_3, %c0_4] : memref<8x16xbf16, #tpu.memory_space<vmem>>, vector<8x16xbf16>
    %4 = arith.truncf %2 : vector<16x64xf32> to vector<16x64xbf16>
    %cst_5 = arith.constant dense<0.000000e+00> : vector<8x64xf32>
    %5 = tpu.matmul %3, %4, %cst_5 {dimension_numbers = #tpu.dot_dimension_numbers<[1], [0], [0], [1], [0, 0, 1, 1], [], []>} : vector<8x16xbf16>, vector<16x64xbf16>, vector<8x64xf32> -> vector<8x64xf32>
    %c0_6 = arith.constant 0 : index
    %c0_7 = arith.constant 0 : index
    %6 = vector.load %arg3[%c0_6, %c0_7] : memref<8x4xf32, #tpu.memory_space<vmem>>, vector<8x4xf32>
    %c0_8 = arith.constant 0 : index
    %c0_9 = arith.constant 0 : index
    %7 = vector.load %arg5[%c0_8, %c0_9] : memref<4x64xf32, #tpu.memory_space<vmem>>, vector<4x64xf32>
    %cst_10 = arith.constant dense<0.000000e+00> : vector<8x64xf32>
    %8 = tpu.matmul %6, %7, %cst_10 {dimension_numbers = #tpu.dot_dimension_numbers<[1], [0], [0], [1], [0, 0, 1, 1], [], []>} : vector<8x4xf32>, vector<4x64xf32>, vector<8x64xf32> -> vector<8x64xf32>
    %9 = arith.addf %5, %8 : vector<8x64xf32>
    %c0_11 = arith.constant 0 : index
    %c0_12 = arith.constant 0 : index
    %10 = vector.load %arg6[%c0_11, %c0_12] : memref<1x64xf32, #tpu.memory_space<vmem>>, vector<1x64xf32>
    %11 = vector.broadcast %10 : vector<1x64xf32> to vector<8x64xf32>
    %12 = arith.addf %9, %11 : vector<8x64xf32>
    %cst_13 = arith.constant 0.000000e+00 : f32
    %13 = vector.broadcast %cst_13 : f32 to vector<8x64xf32>
    %14 = arith.maximumf %12, %13 : vector<8x64xf32>
    %c0_14 = arith.constant 0 : index
    %c0_15 = arith.constant 0 : index
    %15 = vector.load %arg7[%c0_14, %c0_15] : memref<8x64xf32, #tpu.memory_space<vmem>>, vector<8x64xf32>
    tpu.vector_store %arg7[%c0_14, %c0_15], %14 {strides = array<i32>} : memref<8x64xf32, #tpu.memory_space<vmem>>, vector<8x64xf32>,
    return
  }
  func.func @transform_0(%arg0: i32) -> (i32, i32) {
    %c0_i32 = arith.constant 0 : i32
    %c0_i32_0 = arith.constant 0 : i32
    return %arg0, %c0_i32 : i32, i32
  }
  func.func @transform_1(%arg0: i32) -> (i32, i32) {
    %c0_i32 = arith.constant 0 : i32
    %c0_i32_0 = arith.constant 0 : i32
    %c0_i32_1 = arith.constant 0 : i32
    return %c0_i32, %c0_i32_0 : i32, i32
  }
  func.func @transform_2(%arg0: i32) -> (i32, i32) {
    %c0_i32 = arith.constant 0 : i32
    %c0_i32_0 = arith.constant 0 : i32
    return %arg0, %c0_i32 : i32, i32
  }
  func.func @transform_3(%arg0: i32) -> (i32, i32) {
    %c0_i32 = arith.constant 0 : i32
    %c0_i32_0 = arith.constant 0 : i32
    %c0_i32_1 = arith.constant 0 : i32
    return %c0_i32, %c0_i32_0 : i32, i32
  }
  func.func @transform_4(%arg0: i32) -> (i32, i32) {
    %c0_i32 = arith.constant 0 : i32
    %c0_i32_0 = arith.constant 0 : i32
    %c0_i32_1 = arith.constant 0 : i32
    return %c0_i32, %c0_i32_0 : i32, i32
  }
  func.func @transform_5(%arg0: i32) -> (i32, i32) {
    %c0_i32 = arith.constant 0 : i32
    %c0_i32_0 = arith.constant 0 : i32
    %c0_i32_1 = arith.constant 0 : i32
    return %c0_i32, %c0_i32_0 : i32, i32
  }
  func.func @transform_6(%arg0: i32) -> (i32, i32) {
    %c0_i32 = arith.constant 0 : i32
    %c0_i32_0 = arith.constant 0 : i32
    return %arg0, %c0_i32 : i32, i32
  }
}

module attributes {stable_mosaic.version = 11 : i64} {
  func.func @_sage2_head_kernel(%arg0: i32, %arg1: memref<8x16xbf16, #tpu.memory_space<vmem>>, %arg2: memref<16x64xf32, #tpu.memory_space<vmem>>, %arg3: memref<8x64xf32, #tpu.memory_space<vmem>>, %arg4: memref<64x64xf32, #tpu.memory_space<vmem>>, %arg5: memref<64x64xf32, #tpu.memory_space<vmem>>, %arg6: memref<1x64xf32, #tpu.memory_space<vmem>>, %arg7: memref<1x64xf32, #tpu.memory_space<vmem>>, %arg8: memref<1x1xf32, #tpu.memory_space<vmem>>, %arg9: memref<8x1xf32, #tpu.memory_space<vmem>>) attributes {dimension_semantics = [#tpu.dimension_semantics<parallel>], iteration_bounds = array<i64: 2>, scalar_prefetch = 0 : i64, scratch_operands = 0 : i64, tpu.core_type = #tpu.core_type<tc>, window_params = [{transform_indices = @transform_0, window_bounds = array<i64: 8, 16>}, {pipeline_mode = #tpu.pipeline_mode<synchronous>, transform_indices = @transform_1, window_bounds = array<i64: 16, 64>}, {transform_indices = @transform_2, window_bounds = array<i64: 8, 64>}, {pipeline_mode = #tpu.pipeline_mode<synchronous>, transform_indices = @transform_3, window_bounds = array<i64: 64, 64>}, {pipeline_mode = #tpu.pipeline_mode<synchronous>, transform_indices = @transform_4, window_bounds = array<i64: 64, 64>}, {pipeline_mode = #tpu.pipeline_mode<synchronous>, transform_indices = @transform_5, window_bounds = array<i64: 1, 64>}, {pipeline_mode = #tpu.pipeline_mode<synchronous>, transform_indices = @transform_6, window_bounds = array<i64: 1, 64>}, {pipeline_mode = #tpu.pipeline_mode<synchronous>, transform_indices = @transform_7, window_bounds = array<i64: 1, 1>}, {transform_indices = @transform_8, window_bounds = array<i64: 8, 1>}]} {
    %c0 = arith.constant 0 : index
    %c0_0 = arith.constant 0 : index
    %0 = vector.load %arg1[%c0, %c0_0] : memref<8x16xbf16, #tpu.memory_space<vmem>>, vector<8x16xbf16>
    %c0_1 = arith.constant 0 : index
    %c0_2 = arith.constant 0 : index
    %1 = vector.load %arg2[%c0_1, %c0_2] : memref<16x64xf32, #tpu.memory_space<vmem>>, vector<16x64xf32>
    %2 = arith.truncf %1 : vector<16x64xf32> to vector<16x64xbf16>
    %cst = arith.constant dense<0.000000e+00> : vector<8x64xf32>
    %3 = tpu.matmul %0, %2, %cst {dimension_numbers = #tpu.dot_dimension_numbers<[1], [0], [0], [1], [0, 0, 1, 1], [], []>} : vector<8x16xbf16>, vector<16x64xbf16>, vector<8x64xf32> -> vector<8x64xf32>
    %c0_3 = arith.constant 0 : index
    %c0_4 = arith.constant 0 : index
    %4 = vector.load %arg4[%c0_3, %c0_4] : memref<64x64xf32, #tpu.memory_space<vmem>>, vector<64x64xf32>
    %cst_5 = arith.constant dense<0.000000e+00> : vector<8x64xf32>
    %5 = tpu.matmul %3, %4, %cst_5 {dimension_numbers = #tpu.dot_dimension_numbers<[1], [0], [0], [1], [0, 0, 1, 1], [], []>} : vector<8x64xf32>, vector<64x64xf32>, vector<8x64xf32> -> vector<8x64xf32>
    %c0_6 = arith.constant 0 : index
    %c0_7 = arith.constant 0 : index
    %6 = vector.load %arg3[%c0_6, %c0_7] : memref<8x64xf32, #tpu.memory_space<vmem>>, vector<8x64xf32>
    %c0_8 = arith.constant 0 : index
    %c0_9 = arith.constant 0 : index
    %7 = vector.load %arg5[%c0_8, %c0_9] : memref<64x64xf32, #tpu.memory_space<vmem>>, vector<64x64xf32>
    %cst_10 = arith.constant dense<0.000000e+00> : vector<8x64xf32>
    %8 = tpu.matmul %6, %7, %cst_10 {dimension_numbers = #tpu.dot_dimension_numbers<[1], [0], [0], [1], [0, 0, 1, 1], [], []>} : vector<8x64xf32>, vector<64x64xf32>, vector<8x64xf32> -> vector<8x64xf32>
    %9 = arith.addf %5, %8 : vector<8x64xf32>
    %c0_11 = arith.constant 0 : index
    %c0_12 = arith.constant 0 : index
    %10 = vector.load %arg6[%c0_11, %c0_12] : memref<1x64xf32, #tpu.memory_space<vmem>>, vector<1x64xf32>
    %11 = vector.broadcast %10 : vector<1x64xf32> to vector<8x64xf32>
    %12 = arith.addf %9, %11 : vector<8x64xf32>
    %cst_13 = arith.constant 0.000000e+00 : f32
    %13 = vector.broadcast %cst_13 : f32 to vector<8x64xf32>
    %14 = arith.maximumf %12, %13 : vector<8x64xf32>
    %c0_14 = arith.constant 0 : index
    %c0_15 = arith.constant 0 : index
    %15 = vector.load %arg7[%c0_14, %c0_15] : memref<1x64xf32, #tpu.memory_space<vmem>>, vector<1x64xf32>
    %16 = vector.broadcast %15 : vector<1x64xf32> to vector<8x64xf32>
    %17 = arith.mulf %14, %16 : vector<8x64xf32>
    %cst_16 = arith.constant dense<0.000000e+00> : vector<8xf32>
    %18 = vector.multi_reduction <add>, %17, %cst_16 [1] : vector<8x64xf32> to vector<8xf32>
    %19 = vector.shape_cast %18 : vector<8xf32> to vector<8x1xf32>
    %c0_17 = arith.constant 0 : index
    %c0_18 = arith.constant 0 : index
    %20 = vector.load %arg8[%c0_17, %c0_18] : memref<1x1xf32, #tpu.memory_space<vmem>>, vector<1x1xf32>
    %21 = vector.broadcast %20 : vector<1x1xf32> to vector<8x1xf32>
    %22 = arith.addf %19, %21 : vector<8x1xf32>
    %23 = arith.negf %22 : vector<8x1xf32>
    %24 = math.exp %23 : vector<8x1xf32>
    %cst_19 = arith.constant 1.000000e+00 : f32
    %25 = vector.broadcast %cst_19 : f32 to vector<8x1xf32>
    %26 = arith.addf %25, %24 : vector<8x1xf32>
    %27 = arith.divf %25, %26 : vector<8x1xf32>
    %c0_20 = arith.constant 0 : index
    %c0_21 = arith.constant 0 : index
    %28 = vector.load %arg9[%c0_20, %c0_21] : memref<8x1xf32, #tpu.memory_space<vmem>>, vector<8x1xf32>
    tpu.vector_store %arg9[%c0_20, %c0_21], %27 {strides = array<i32>} : memref<8x1xf32, #tpu.memory_space<vmem>>, vector<8x1xf32>,
    return
  }
  func.func @transform_0(%arg0: i32) -> (i32, i32) {
    %c0_i32 = arith.constant 0 : i32
    %c0_i32_0 = arith.constant 0 : i32
    return %arg0, %c0_i32 : i32, i32
  }
  func.func @transform_1(%arg0: i32) -> (i32, i32) {
    %c0_i32 = arith.constant 0 : i32
    %c0_i32_0 = arith.constant 0 : i32
    %c0_i32_1 = arith.constant 0 : i32
    return %c0_i32, %c0_i32_0 : i32, i32
  }
  func.func @transform_2(%arg0: i32) -> (i32, i32) {
    %c0_i32 = arith.constant 0 : i32
    %c0_i32_0 = arith.constant 0 : i32
    return %arg0, %c0_i32 : i32, i32
  }
  func.func @transform_3(%arg0: i32) -> (i32, i32) {
    %c0_i32 = arith.constant 0 : i32
    %c0_i32_0 = arith.constant 0 : i32
    %c0_i32_1 = arith.constant 0 : i32
    return %c0_i32, %c0_i32_0 : i32, i32
  }
  func.func @transform_4(%arg0: i32) -> (i32, i32) {
    %c0_i32 = arith.constant 0 : i32
    %c0_i32_0 = arith.constant 0 : i32
    %c0_i32_1 = arith.constant 0 : i32
    return %c0_i32, %c0_i32_0 : i32, i32
  }
  func.func @transform_5(%arg0: i32) -> (i32, i32) {
    %c0_i32 = arith.constant 0 : i32
    %c0_i32_0 = arith.constant 0 : i32
    %c0_i32_1 = arith.constant 0 : i32
    return %c0_i32, %c0_i32_0 : i32, i32
  }
  func.func @transform_6(%arg0: i32) -> (i32, i32) {
    %c0_i32 = arith.constant 0 : i32
    %c0_i32_0 = arith.constant 0 : i32
    %c0_i32_1 = arith.constant 0 : i32
    return %c0_i32, %c0_i32_0 : i32, i32
  }
  func.func @transform_7(%arg0: i32) -> (i32, i32) {
    %c0_i32 = arith.constant 0 : i32
    %c0_i32_0 = arith.constant 0 : i32
    %c0_i32_1 = arith.constant 0 : i32
    return %c0_i32, %c0_i32_0 : i32, i32
  }
  func.func @transform_8(%arg0: i32) -> (i32, i32) {
    %c0_i32 = arith.constant 0 : i32
    %c0_i32_0 = arith.constant 0 : i32
    return %arg0, %c0_i32 : i32, i32
  }
}

</mosaic_0001>

<bundles_post_ra>
// kernel: bus_stop_predictor.2
= control target key start
LH: loop header
LB: loop body
LE: loop exit
PB: predicated region body
PF: predicated region fallthrough
CT: control target
= control target key end

     0   :  { %s649_s21 = smov 0   ;;  %s691_s0 = inlined_call_operand.vmem [shape: bf16[16,16], index: 0, kind: input, shape index: {}]   ;;  %s692_s1 = inlined_call_operand.vmem [shape: f32[16,4], index: 1, kind: input, shape index: {}, may-alias: {1,2}]   ;;  %s693_s2 = inlined_call_operand.vmem [shape: f32[16,4], index: 2, kind: input, shape index: {}, may-alias: {1,2}]   ;;  %s694_s3 = inlined_call_operand.vmem [shape: f32[4,64], index: 3, kind: input, shape index: {}]   ;;  %s695_s4 = inlined_call_operand.vmem [shape: f32[4,64], index: 4, kind: input, shape index: {}]   ;;  %s696_s5 = inlined_call_operand.vmem [shape: f32[1,64], index: 5, kind: input, shape index: {}]   ;;  %s697_s6 = inlined_call_operand.vmem [shape: f32[16,64], index: 6, kind: output, shape index: {}]  }
   0x1 LB: > { %s554_s22 = sadd.s32 4294967295, %s610_s21   ;;  %p558_p0 = scmp.ge.s32.totalorder %s610_s21, 1  ;;  %s610_s21 = sphi %s649_s21, %s16_s21  }
   0x2   : > { %p220_p1 = scmp.lt.s32.totalorder %s610_s21, 3 }
   0x4   : > { %p221_p2 = pnand %p558_p0, %p220_p1 }
   0x5   : > { %v267_v0 = vld [vmem:[%s694_s3] sm:$0xf] (!%p221_p2)  ;;  %vm275_vm0 = vcmask (!%p221_p2), 1043456   ;;  %vm268_vm1 = vcmask (!%p221_p2), 31744   ;;  %v266_v2 = vld [vmem:[%s692_s1 + $0x8] sm:$0xff] (!%p221_p2)  ;;  %p252_p3 = scmp.lt.s32.totalorder (!%p221_p2), %s554_s22, 1 }
   0x6   : > { %224 = sbr.rel (%p221_p2) target bundleno = 445 (0x1bd), region = 44  ;;  %v265_v1 = vld [vmem:[%s692_s1] sm:$0xff] (!%p221_p2)  ;;  %578 = vmatprep.subr.msk.mxu1 (!%p221_p2), %vm275_vm0, %v267_v0  ;;  %v612_v4 = vmov (!%p221_p2), 0.0   ;;  %vm613_vm2 = vmmov (!%p221_p2), 0   ;;  %vm434_vm3 = vcmask (!%p221_p2), 130048   ;;  %vm487_vm4 = vcmask (!%p221_p2), 523264  }
   0x7   : > { %580 = vmatprep.mubr.msk.f32.mxu1 (!%p221_p2), %vm268_vm1, %v265_v1  ;;  %579 = vmatpush3.msk.msra.mxu1 (!%p221_p2), %vm275_vm0, %v267_v0  ;;  %v357_v3 = vld [vmem:[%s695_s4] sm:$0xf] (!%p221_p2) }
   0x8   : > { %581 = vmatmul.mubr.msk.f32.vlgmr.msra.gmra.mrb[0].mxu1 (!%p221_p2), %vm268_vm1, %v266_v2  ;;  %583 = vmatprep.subr.mxu1 (!%p221_p2), %v612_v4  ;;  %v568_v13 = vld [vmem:[%s696_s5] ss:$0 sm:$0xff] (!%p221_p2) }
   0x9   : > { %588 = vmatprep.subr.bf16.mxu0 (!%p221_p2), %v612_v4  ;;  %584 = vmatpush3.msk.msra.mxu1 (!%p221_p2), %vm275_vm0, %v357_v3 }
   0xa   : > { %585 = vmatprep.mubr.msk.f32.mxu1 (!%p221_p2), %vm613_vm2, %v612_v4  ;;  %590 = vmatprep.mubr.msk.bf16.mxu0 (!%p221_p2), %vm613_vm2, %v612_v4 }
   0xd   : > { %s699_s22 = smov (!%p252_p3, %s554_s22), 1 }
   0xe   : > { %s560_s7 = sshll.u32 %s699_s22, 3  ;;  %s559_s11 = sshll.u32 %s699_s22, 2 }
   0xf   : > { %s259_s10 = scalar_lea.vmem %s693_s2, %s560_s7  ;;  %s255_s14 = scalar_lea.vmem %s691_s0, %s559_s11 }
  0x10   : > { %v356_v5 = vld [vmem:[%s259_s10] sm:$0xff]  ;;  %s263_s19 = scalar_lea.vmem %s697_s6, %s560_s7 }
  0x11   : > { %586 = vmatmul.mubr.msk.f32.vlgmr.msra.gmra.mrb[2].mxu1 %vm268_vm1, %v356_v5  ;;  %v354_v9 = vld [vmem:[%s255_s14] sm:$0xf] }
  0xdb   : > { %v582_v6 = vpop.f32.mrb[0].mxu1 }
  0xdc   : > { %v345_v7 = vpop.f32.mrb[1].mxu1 }
  0xdd   : > { %v355_v8 = vpack.c.bf16 %v582_v6, %v345_v7 }
  0xdf   : > { %589 = vmatpush3.bf16.msra.mxu0 %v355_v8 }
  0xe2   : > { %591 = vmatmul.mubr.msk.bf16.vlgmr.msra.gmra.mrb[0].mxu0 %vm434_vm3, %v354_v9 }
  0xe4   : > { %v430_v10 = vpop.f32.mrb[2].mxu1 }
  0xe5   : > { %v587_v11 = vpop.f32.mrb[3].mxu1 }
 0x1b5   : > { %v472_v12 = vpop.f32.mrb[0].mxu0 }
 0x1b6   : > { %v473_v14 = vadd.f32 %v472_v12, %v430_v10  ;;  %v592_v15 = vpop.f32.mrb[1].mxu0 }
 0x1b7   : > { %v475_v16 = vpop.f32.mrb[2].mxu0 }
 0x1b8   : > { %v485_v17 = vadd.f32 %v568_v13, %v473_v14  ;;  %v593_v18 = vpop.f32.mrb[3].mxu0 }
 0x1ba   : > { %v486_v19 = vmax.f32 %v485_v17, 0.0 }
 0x1bc   : > { %488 = vst.msk [vmem:[%s263_s19] sm:$0xff] %vm487_vm4, %v486_v19 }
 0x1bd PF: > { %s16_s21 = sadd.s32 1, %s610_s21  }
 0x1be   : > { %p13_p4 = scmp.ge.s32.totalorder %s16_s21, 4  }
 0x1c0   :  { %15 = sbr.rel (!%p13_p4) target bundleno = 1 (0x1), region = 77 }

// kernel: bus_stop_predictor.3
= control target key start
LH: loop header
LB: loop body
LE: loop exit
PB: predicated region body
PF: predicated region fallthrough
CT: control target
= control target key end

     0   :  { %s813_s29 = smov 0   ;;  %s907_s0 = inlined_call_operand.vmem [shape: bf16[16,16], index: 0, kind: input, shape index: {}]   ;;  %s908_s1 = inlined_call_operand.vmem [shape: f32[16,64], index: 1, kind: input, shape index: {}, may-alias: {1,2}]   ;;  %s909_s2 = inlined_call_operand.vmem [shape: f32[16,64], index: 2, kind: input, shape index: {}, may-alias: {1,2}]   ;;  %s910_s3 = inlined_call_operand.vmem [shape: f32[64,64], index: 3, kind: input, shape index: {}]   ;;  %s911_s4 = inlined_call_operand.vmem [shape: f32[64,64], index: 4, kind: input, shape index: {}]   ;;  %s912_s5 = inlined_call_operand.vmem [shape: f32[1,64], index: 5, kind: input, shape index: {}]   ;;  %s913_s6 = inlined_call_operand.vmem [shape: f32[1,64], index: 6, kind: input, shape index: {}]   ;;  %s914_s7 = inlined_call_operand.<no memory space> [shape: f32[1,1], index: 7, kind: input, shape index: {}]   ;;  %s915_s8 = inlined_call_operand.vmem [shape: f32[16,1], index: 8, kind: output, shape index: {}]  }
   0x1   :  { %v13_v0 = vstv %s914_s7 }
   0x2   :  { %14 = vst [vmem:[#allocation2] sm:$0x1] %v13_v0 }
   0x3 LB: > { %s634_s30 = sadd.s32 4294967295, %s760_s29   ;;  %p638_p0 = scmp.ge.s32.totalorder %s760_s29, 1  ;;  %s760_s29 = sphi %s813_s29, %s20_s29  }
   0x4   : > { %p272_p1 = scmp.lt.s32.totalorder %s760_s29, 3 }
   0x6   : > { %p273_p2 = pnand %p638_p0, %p272_p1 }
   0x7   : > { %v322_v1 = vld [vmem:[%s908_s1] sm:$0xff] (!%p273_p2)  ;;  %v323_v2 = vld [vmem:[%s908_s1 + $0x8] sm:$0xff] (!%p273_p2)  ;;  %p308_p3 = scmp.lt.s32.totalorder (!%p273_p2), %s634_s30, 1  ;;  %v762_v3 = vmov (!%p273_p2), 0.0   ;;  %vm763_vm0 = vmmov (!%p273_p2), 0   ;;  %v764_v8 = vmov (!%p273_p2), 0.0|0.0  }
   0x8   : > { %276 = sbr.rel (%p273_p2) target bundleno = 623 (0x26f), region = 52  ;;  %671 = vmatprep.subr.bf16.mxu0 (!%p273_p2), %v762_v3  ;;  %v324_v4 = vpack.c.bf16 (!%p273_p2), %v323_v2, %v322_v1  ;;  %673 = vmatprep.mubr.msk.bf16.mxu0 (!%p273_p2), %vm763_vm0, %v762_v3  ;;  %v378_v5 = vld [vmem:[%s911_s4] sm:$0xff] (!%p273_p2)  ;;  %v379_v6 = vld [vmem:[%s911_s4 + $0x8] sm:$0xff] (!%p273_p2)  ;;  %v380_v11 = vld [vmem:[%s911_s4 + $0x10] sm:$0xff] (!%p273_p2)  ;;  %vm325_vm1 = vcmask (!%p273_p2), 130048   ;;  %vm386_vm2 = vcmask (!%p273_p2), 523264  }
   0x9   : > { %v369_v7 = vld [vmem:[%s910_s3] sm:$0xff] (!%p273_p2)  ;;  %715 = vmatprep.subr.bf16.mxu1 (!%p273_p2), %v764_v8  ;;  %v716_v9 = vpack.c.bf16 (!%p273_p2), %v379_v6, %v378_v5  ;;  %v370_v10 = vld [vmem:[%s910_s3 + $0x8] sm:$0xff] (!%p273_p2)  ;;  %v381_v12 = vld [vmem:[%s911_s4 + $0x18] sm:$0xff] (!%p273_p2)  ;;  %693 = vmatprep.mubr.msk.f32.mxu1 (!%p273_p2), %vm763_vm0, %v762_v3  ;;  %vm567_vm3 = vcmask (!%p273_p2), 7168  }
   0xa   : > { %672 = vmatpush3.bf16.msra.mxu0 (!%p273_p2), %v324_v4  ;;  %v728_v13 = vpack.c.bf16 (!%p273_p2), %v370_v10, %v369_v7  ;;  %v719_v14 = vpack.c.bf16 (!%p273_p2), %v381_v12, %v380_v11  ;;  %v371_v15 = vld [vmem:[%s910_s3 + $0x10] sm:$0xff] (!%p273_p2)  ;;  %v372_v16 = vld [vmem:[%s910_s3 + $0x18] sm:$0xff] (!%p273_p2)  ;;  %v382_v17 = vld [vmem:[%s911_s4 + $0x20] sm:$0xff] (!%p273_p2) }
   0xb   : > { %717 = vmatpush3.bf16.msra.mxu1 (!%p273_p2), %v716_v9  ;;  %727 = vmatprep.subr.bf16.mxu0 (!%p273_p2), %v764_v8  ;;  %v383_v18 = vld [vmem:[%s911_s4 + $0x28] sm:$0xff] (!%p273_p2)  ;;  %v731_v20 = vpack.c.bf16 (!%p273_p2), %v372_v16, %v371_v15  ;;  %v373_v22 = vld [vmem:[%s910_s3 + $0x20] sm:$0xff] (!%p273_p2)  ;;  %v384_v24 = vld [vmem:[%s911_s4 + $0x30] sm:$0xff] (!%p273_p2) }
   0xc   : > { %718 = vmatprep.subr.bf16.mxu1 (!%p273_p2), %v764_v8  ;;  %v722_v21 = vpack.c.bf16 (!%p273_p2), %v383_v18, %v382_v17  ;;  %v374_v23 = vld [vmem:[%s910_s3 + $0x28] sm:$0xff] (!%p273_p2)  ;;  %v385_v25 = vld [vmem:[%s911_s4 + $0x38] sm:$0xff] (!%p273_p2)  ;;  %v375_v28 = vld [vmem:[%s910_s3 + $0x30] sm:$0xff] (!%p273_p2) }
   0xd   : > { %v734_v26 = vpack.c.bf16 (!%p273_p2), %v374_v23, %v373_v22  ;;  %v725_v27 = vpack.c.bf16 (!%p273_p2), %v385_v25, %v384_v24  ;;  %v376_v29 = vld [vmem:[%s910_s3 + $0x38] sm:$0xff] (!%p273_p2)  ;;  %v645_v39 = vld [vmem:[%s912_s5] ss:$0 sm:$0xff] (!%p273_p2) }
   0xe   : > { %v737_v30 = vpack.c.bf16 (!%p273_p2), %v376_v29, %v375_v28  ;;  %v646_v43 = vld [vmem:[%s913_s6] ss:$0 sm:$0xff] (!%p273_p2) }
   0xf   : > { %s917_s30 = smov (!%p308_p3, %s634_s30), 1  ;;  %720 = vmatpush3.bf16.msra.mxu1 %v719_v14  ;;  %v647_v47 = vld [vmem:[#allocation2] ss:$0 sm:$0xff] }
  0x10   : > { %s639_s24 = sshll.u32 %s917_s30, 2  ;;  %721 = vmatprep.subr.bf16.mxu1 %v764_v8  ;;  %s640_s27 = sshll.u32 %s917_s30, 3 }
  0x11   : > { %s311_s9 = scalar_lea.vmem %s907_s0, %s639_s24  ;;  %s315_s10 = scalar_lea.vmem %s909_s2, %s640_s27 }
  0x12   : > { %v321_v19 = vld [vmem:[%s311_s9] sm:$0xf]  ;;  %s319_s16 = scalar_lea.vmem %s915_s8, %s640_s27 }
  0x13   : > { %674 = vmatmul.mubr.msk.bf16.vlgmr.msra.gmra.mrb[0].mxu0 %vm325_vm1, %v321_v19  ;;  %723 = vmatpush3.bf16.msra.mxu1 %v722_v21  ;;  %v377_v31 = vld [vmem:[%s315_s10] sm:$0xff] }
  0x14   : > { %729 = vmatpush3.bf16.msra.mxu0 %v728_v13  ;;  %712 = vmatprep.mubr.msk.f32.mxu0 %vm763_vm0, %v762_v3 }
  0x15   : > { %730 = vmatprep.subr.bf16.mxu0 %v764_v8  ;;  %724 = vmatprep.subr.bf16.mxu1 %v764_v8 }
  0x17   : > { %726 = vmatpush3.bf16.msra.mxu1 %v725_v27 }
  0x18   : > { %732 = vmatpush3.bf16.msra.mxu0 %v731_v20 }
  0x19   : > { %733 = vmatprep.subr.bf16.mxu0 %v764_v8 }
  0x1a   : > { %694 = vmatmul.mubr.msk.f32.vlgmr.msra.gmra.mrb[0].mxu1 %vm386_vm2, %v377_v31 }
  0x1c   : > { %735 = vmatpush3.bf16.msra.mxu0 %v734_v26 }
  0x1d   : > { %736 = vmatprep.subr.bf16.mxu0 %v764_v8 }
  0x20   : > { %738 = vmatpush3.bf16.msra.mxu0 %v737_v30 }
  0xe6   : > { %v363_v32 = vpop.f32.mrb[0].mxu0 }
  0xe7   : > { %v675_v33 = vpop.f32.mrb[1].mxu0  ;;  %713 = vmatmul.mubr.msk.f32.vlgmr.msra.gmra.mrb[4].mxu0 %vm386_vm2, %v363_v32 }
  0xe8   : > { %v366_v34 = vpop.f32.mrb[2].mxu0 }
  0xe9   : > { %v676_v35 = vpop.f32.mrb[3].mxu0 }
  0xed   : > { %v456_v36 = vpop.f32.mrb[0].mxu1 }
  0xee   : > { %v695_v37 = vpop.f32.mrb[1].mxu1 }
 0x1ba   : > { %v529_v38 = vpop.f32.mrb[4].mxu0 }
 0x1bb   : > { %v530_v40 = vadd.f32 %v529_v38, %v456_v36  ;;  %v714_v41 = vpop.f32.mrb[5].mxu0 }
 0x1bd   : > { %v540_v42 = vadd.f32 %v645_v39, %v530_v40 }
 0x1bf   : > { %v541_v44 = vmax.f32 %v540_v42, 0.0 }
 0x1c1   : > { %v549_v45 = vmul.f32 %v646_v43, %v541_v44 }
 0x1c3   : > { %v550_v46 = vsel %vm386_vm2, %v549_v45, 0.0 }
 0x1c4   : > { %551 = vadd.xlane.f32.xlu0 %v550_v46 }
 0x251   : > { %v552_v48 = vpop.xlane.xlu0 %551 }
 0x252   : > { %v560_v49 = vadd.f32 %v647_v47, %v552_v48 }
 0x254   : > { %v648_v50 = vmul.f32 -1.442695, %v560_v49 }
 0x256   : > { %750 = vpow2.f32 %v648_v50 }
 0x260   : > { %v751_v51 = vpop.eup %750 }
 0x261   : > { %v564_v52 = vadd.f32 1.0, %v751_v51 }
 0x263   : > { %752 = vrcp.f32 %v564_v52 }
 0x26d   : > { %v753_v53 = vpop.eup %752 }
 0x26e   : > { %568 = vst.msk [vmem:[%s319_s16] sm:$0xff] %vm567_vm3, %v753_v53 }
 0x26f PF: > { %s20_s29 = sadd.s32 1, %s760_s29  }
 0x270   : > { %p17_p4 = scmp.ge.s32.totalorder %s20_s29, 4  }
 0x272   :  { %19 = sbr.rel (!%p17_p4) target bundleno = 3 (0x3), region = 85 }

</bundles_post_ra>
